<compile_context>
chip_gen: v7x
topology: tpu7x:2x2x1
jax: 0.10.0
libtpu: 0.0.40
codegen_flags: <defaults>
</compile_context>

<pallas_src>
import functools

import jax
import jax.numpy as jnp
from jax import lax
from jax.experimental import pallas as pl
from jax.experimental.pallas import tpu as pltpu

_LANES = 128          # vreg lane width
_SUB_ROWS = 256       # rows per fused load->compute->accumulate sub-tile


def _round_up(x, m):
  return -(-x // m) * m


def _pow_gamma(x, gamma):
  """x ** gamma; small-integer gamma (default 2) uses VPU multiplies.
  Fractional gamma lowers to exp(g*log(x)) -> 2 extra EUP ops per factor."""
  g = float(gamma)
  if g == float(int(g)) and 1 <= int(g) <= 4:
    r = x
    for _ in range(int(g) - 1):
      r = r * x
    return r
  return x ** g


def _focal_elem(x_raw, c_signed, *, gamma, ious_mode):
  """Element-wise focal loss on a (rows,128) sub-tile.

  c_signed encodes both the coefficient and the one-hot label:
    label==1 ->  + alpha     * loss_weight/avg_factor * weight
    label==0 ->  - (1-alpha) * loss_weight/avg_factor * weight * (t>=0)
  """
  x = x_raw.astype(jnp.float32)
  y_pos = c_signed > 0.0                     # recovered one-hot label
  c = jnp.abs(c_signed)                      # recovered coefficient

  z = jnp.where(y_pos, -x, x)                # (1-2y)*x
  t = jnp.exp(-jnp.abs(z))                   # exp(-|x|)
  r = 1.0 / (1.0 + t)                        # exact divide (tolerance-safe)
  loss = jnp.maximum(z, 0.0) + jnp.log(1.0 + t)   # == max(x,0)-x*y+log1p(e^-|x|)

  om = jnp.where(z < 0.0, t, 1.0) * r        # = 1 - exp(-loss), exactly >= 0
  if ious_mode:
    # Active ious-branch of the module: positive term uses (1+exp(-loss))**g.
    opl = jnp.where(z < 0.0, 2.0 + t, 1.0 + 2.0 * t) * r   # = 1 + exp(-loss)
    mod = jnp.where(y_pos, _pow_gamma(opl, gamma), _pow_gamma(om, gamma))
  else:
    mod = _pow_gamma(om, gamma)
  return c * loss * mod


def _focal_kernel(logits_ref, coef_ref, out_ref, *, gamma, ious_mode,
                  sub_rows):
  """Streams one (blk,128) block; writes one (8,128) partial-sum block."""
  blk = logits_ref.shape[0]
  nsub = blk // sub_rows

  def sub_partial(i):
    x = logits_ref[pl.ds(i, sub_rows), :]
    c = coef_ref[pl.ds(i, sub_rows), :]
    focal = _focal_elem(x, c, gamma=gamma, ious_mode=ious_mode)
    # (sub_rows,128) -> (8,128): sublane-aligned VPU adds, short chain,
    # small per-sub-tile intermediates.
    return jnp.sum(focal.reshape(sub_rows // 8, 8, _LANES), axis=0)

  if nsub == 1:
    out_ref[...] = sub_partial(0)
  else:
    def body(s, acc):
      i = pl.multiple_of(s * sub_rows, sub_rows)
      return acc + sub_partial(i)
    out_ref[...] = lax.fori_loop(0, nsub, body,
                                 jnp.zeros((8, _LANES), jnp.float32),
                                 unroll=(nsub <= 8))


def pz_sigmoid_focal_loss(logits, targets, weight=None, avg_factor=None,
                          gamma=2.0, alpha=0.25, loss_weight=1.0,
                          ious=None, block_rows=2048):
  """logits (N,C), targets (N,) int, weight (N,) -> scalar loss."""
  N, C = logits.shape
  if avg_factor is None:
    # TODO(synk): the PyTorch module divides by avg_factor unconditionally and
    # would fail for None; default to 1.0 here instead of crashing.
    avg_factor = 1.0

  t_col = targets.astype(jnp.int32)[:, None]                      # (N,1)
  class_range = jnp.arange(1, C + 1, dtype=jnp.int32)[None, :]    # (1,C)
  is_pos = t_col == class_range                                   # (N,C)
  valid = (t_col >= 0).astype(jnp.float32)                        # (N,1)
  w = (jnp.ones((N, 1), jnp.float32) if weight is None
       else weight.astype(jnp.float32).reshape(N, 1))             # (N,1)

  scale = (jnp.asarray(loss_weight, jnp.float32)
           / jnp.asarray(avg_factor, jnp.float32))
  # Single sign-encoded coefficient stream (assumes weight >= 0).
  coef_signed = jnp.where(
      is_pos,
      (alpha * scale) * w,
      (-(1.0 - alpha) * scale) * (valid * w)).astype(jnp.float32)  # (N,C)

  # NOTE: in the module's active ious-branch the iou values cancel out (only
  # the (1+exp(-loss))**gamma positive form remains), so ious is never DMA'd.
  ious_mode = ious is not None

  # ---- lane-dense flatten: (N,C) -> (rows_padded, 128) ----
  total = N * C
  rows = -(-total // _LANES)
  blk = min(int(block_rows), _round_up(rows, 8))
  blk = _round_up(max(blk, 8), 8)
  if blk > _SUB_ROWS:
    blk = _round_up(blk, _SUB_ROWS)        # keep blk a multiple of the sub-tile
  sub_rows = min(_SUB_ROWS, blk)
  nblocks = -(-rows // blk)
  rows_padded = nblocks * blk
  pad = rows_padded * _LANES - total

  def lane_dense(x, dtype):
    x = x.reshape(-1).astype(dtype)
    if pad:
      x = jnp.concatenate([x, jnp.zeros((pad,), dtype)])  # coef pad==0 -> 0
    return x.reshape(rows_padded, _LANES)

  logits_ld = lane_dense(logits, logits.dtype)   # native dtype (bf16 halves HBM)
  coef_ld = lane_dense(coef_signed, jnp.float32)

  kernel = functools.partial(_focal_kernel, gamma=float(gamma),
                             ious_mode=ious_mode, sub_rows=sub_rows)

  partials = pl.pallas_call(
      kernel,
      out_shape=jax.ShapeDtypeStruct((nblocks * 8, _LANES), jnp.float32),
      grid_spec=pltpu.PrefetchScalarGridSpec(
          num_scalar_prefetch=0,
          grid=(nblocks,),
          in_specs=[pl.BlockSpec((blk, _LANES), lambda i: (i, 0)),
                    pl.BlockSpec((blk, _LANES), lambda i: (i, 0))],
          out_specs=pl.BlockSpec((8, _LANES), lambda i: (i, 0)),
      ),
      compiler_params=pltpu.CompilerParams(
          dimension_semantics=("parallel",),
          vmem_limit_bytes=32 * 1024 * 1024),
  )(logits_ld, coef_ld)

  # Tiny final reduction over per-block partial sums (scale already folded).
  return jnp.sum(partials)


def _reference(logits, targets, weight, avg_factor,
               gamma=2.0, alpha=0.25, loss_weight=1.0, ious=None):
  """Direct transcription of the PyTorch module's math (original form)."""
  N, C = logits.shape
  class_range = jnp.arange(1, C + 1, dtype=jnp.int32)[None, :]
  t = targets.astype(jnp.int32)[:, None]
  labels = (t == class_range).astype(jnp.float32)
  x = logits.astype(jnp.float32)
  loss = (jnp.maximum(x, 0.0) - x * labels
          + jnp.log(1.0 + jnp.exp(-jnp.abs(x))))
  if ious is None:
    pos = alpha * labels * loss * (1.0 - jnp.exp(-loss)) ** gamma
  else:
    pos = alpha * labels * loss * (1.0 + jnp.exp(-loss)) ** gamma
  neg = ((1.0 - alpha) * (1.0 - labels) * (t >= 0).astype(jnp.float32)
         * loss * (1.0 - jnp.exp(-loss)) ** gamma)
  focal = pos + neg
  return loss_weight * jnp.sum(focal * weight[:, None]) / avg_factor


if __name__ == "__main__":
  key = jax.random.PRNGKey(0)
  k1, k2, k3, k4 = jax.random.split(key, 4)

  N, C = 64, 8                        # 64 boxes, 8 categories
  logits = jax.random.normal(k1, (N, C), dtype=jnp.float32) * 2.0
  # targets in [-1, C]: 0 = background, -1 = ignore, 1..C = classes
  targets = jax.random.randint(k2, (N,), -1, C + 1, dtype=jnp.int32)
  weight = jax.random.uniform(k3, (N,), dtype=jnp.float32)
  ious = jax.random.uniform(k4, (N,), dtype=jnp.float32)
  avg_factor = float(jnp.sum(targets > 0)) + 1.0

  # --- ious=None path ---
  out = pz_sigmoid_focal_loss(logits, targets, weight, avg_factor)
  out = jax.block_until_ready(out)
  ref = _reference(logits, targets, weight, avg_factor)
  assert jnp.allclose(out, ref, rtol=1e-4, atol=1e-5), (out, ref)

  # --- ious path ("1+p" pos variant; iou values cancel in the reference) ---
  out_i = pz_sigmoid_focal_loss(logits, targets, weight, avg_factor, ious=ious)
  out_i = jax.block_until_ready(out_i)
  ref_i = _reference(logits, targets, weight, avg_factor, ious=ious)
  assert jnp.allclose(out_i, ref_i, rtol=1e-4, atol=1e-5), (out_i, ref_i)

  print("KERNEL_OK")
</pallas_src>

<mosaic_0001>
module attributes {stable_mosaic.version = 11 : i64} {
  func.func @_focal_kernel(%arg0: i32, %arg1: memref<8x128xf32, #tpu.memory_space<vmem>>, %arg2: memref<8x128xf32, #tpu.memory_space<vmem>>, %arg3: memref<8x128xf32, #tpu.memory_space<vmem>>) attributes {dimension_semantics = [#tpu.dimension_semantics<parallel>], iteration_bounds = array<i64: 1>, scalar_prefetch = 0 : i64, scratch_operands = 0 : i64, tpu.core_type = #tpu.core_type<tc>, window_params = [{transform_indices = @transform_0, window_bounds = array<i64: 8, 128>}, {transform_indices = @transform_1, window_bounds = array<i64: 8, 128>}, {transform_indices = @transform_2, window_bounds = array<i64: 8, 128>}]} {
    %c0 = arith.constant 0 : index
    %c0_0 = arith.constant 0 : index
    %0 = vector.load %arg1[%c0, %c0_0] : memref<8x128xf32, #tpu.memory_space<vmem>>, vector<8x128xf32>
    %c0_1 = arith.constant 0 : index
    %c0_2 = arith.constant 0 : index
    %1 = vector.load %arg2[%c0_1, %c0_2] : memref<8x128xf32, #tpu.memory_space<vmem>>, vector<8x128xf32>
    %cst = arith.constant 0.000000e+00 : f32
    %2 = vector.broadcast %cst : f32 to vector<8x128xf32>
    %3 = arith.cmpf ogt, %1, %2 : vector<8x128xf32>
    %4 = math.absf %1 : vector<8x128xf32>
    %cst_3 = arith.constant 0.000000e+00 : f32
    %5 = vector.broadcast %cst_3 : f32 to vector<8x128xf32>
    %6 = arith.subf %5, %0 : vector<8x128xf32>
    %7 = arith.select %3, %6, %0 : vector<8x128xi1>, vector<8x128xf32>
    %8 = math.absf %7 : vector<8x128xf32>
    %cst_4 = arith.constant 0.000000e+00 : f32
    %9 = vector.broadcast %cst_4 : f32 to vector<8x128xf32>
    %10 = arith.subf %9, %8 : vector<8x128xf32>
    %11 = math.exp %10 : vector<8x128xf32>
    %cst_5 = arith.constant 1.000000e+00 : f32
    %12 = vector.broadcast %cst_5 : f32 to vector<8x128xf32>
    %13 = arith.addf %12, %11 : vector<8x128xf32>
    %cst_6 = arith.constant 1.000000e+00 : f32
    %14 = vector.broadcast %cst_6 : f32 to vector<8x128xf32>
    %15 = arith.divf %14, %13 : vector<8x128xf32>
    %cst_7 = arith.constant 0.000000e+00 : f32
    %16 = vector.broadcast %cst_7 : f32 to vector<8x128xf32>
    %17 = arith.maximumf %7, %16 : vector<8x128xf32>
    %cst_8 = arith.constant 1.000000e+00 : f32
    %18 = vector.broadcast %cst_8 : f32 to vector<8x128xf32>
    %19 = arith.addf %18, %11 : vector<8x128xf32>
    %20 = math.log %19 : vector<8x128xf32>
    %21 = arith.addf %17, %20 : vector<8x128xf32>
    %cst_9 = arith.constant 0.000000e+00 : f32
    %22 = vector.broadcast %cst_9 : f32 to vector<8x128xf32>
    %23 = arith.cmpf olt, %7, %22 : vector<8x128xf32>
    %cst_10 = arith.constant 1.000000e+00 : f32
    %24 = vector.broadcast %cst_10 : f32 to vector<8x128xf32>
    %25 = arith.select %23, %11, %24 : vector<8x128xi1>, vector<8x128xf32>
    %26 = arith.mulf %25, %15 : vector<8x128xf32>
    %27 = arith.mulf %26, %26 : vector<8x128xf32>
    %28 = arith.mulf %4, %21 : vector<8x128xf32>
    %29 = arith.mulf %28, %27 : vector<8x128xf32>
    %30 = vector.shape_cast %29 : vector<8x128xf32> to vector<1x8x128xf32>
    %cst_11 = arith.constant dense<0.000000e+00> : vector<8x128xf32>
    %31 = vector.multi_reduction <add>, %30, %cst_11 [0] : vector<1x8x128xf32> to vector<8x128xf32>
    %c0_12 = arith.constant 0 : index
    %c0_13 = arith.constant 0 : index
    %32 = vector.load %arg3[%c0_12, %c0_13] : memref<8x128xf32, #tpu.memory_space<vmem>>, vector<8x128xf32>
    tpu.vector_store %arg3[%c0_12, %c0_13], %31 {strides = array<i32>} : memref<8x128xf32, #tpu.memory_space<vmem>>, vector<8x128xf32>,
    return
  }
  func.func @transform_0(%arg0: i32) -> (i32, i32) {
    %c0_i32 = arith.constant 0 : i32
    %c0_i32_0 = arith.constant 0 : i32
    return %arg0, %c0_i32 : i32, i32
  }
  func.func @transform_1(%arg0: i32) -> (i32, i32) {
    %c0_i32 = arith.constant 0 : i32
    %c0_i32_0 = arith.constant 0 : i32
    return %arg0, %c0_i32 : i32, i32
  }
  func.func @transform_2(%arg0: i32) -> (i32, i32) {
    %c0_i32 = arith.constant 0 : i32
    %c0_i32_0 = arith.constant 0 : i32
    return %arg0, %c0_i32 : i32, i32
  }
}

</mosaic_0001>

<bundles_post_ra>
// kernel: tpu_custom_call.1
= control target key start
LH: loop header
LB: loop body
LE: loop exit
PB: predicated region body
PF: predicated region fallthrough
CT: control target
= control target key end

     0   :  { %7 = vsyncpa [#allocation3], 0  ;;  %s212_s0 = inlined_call_operand.hbm [shape: f32[8,128], index: 0, kind: input, shape index: {}]   ;;  %s213_s1 = inlined_call_operand.hbm [shape: f32[8,128], index: 1, kind: input, shape index: {}]   ;;  %s214_s2 = inlined_call_operand.hbm [shape: f32[8,128], index: 2, kind: output, shape index: {}]  }
   0x1   :  { %8 = vsyncpa [#allocation6], 0 }
   0x2   :  { %9 = vsyncpa [#allocation4], 0  ;;  %s158_s9 = smov [#allocation2]   ;;  %s159_s11 = smov [#allocation5]  }
   0x3   :  { %s16_s10 = sshll.u32 %s158_s9, 4  ;;  %s26_s12 = sshll.u32 %s159_s11, 4  ;;  %s17_s10 = int_to_ptr.vmem [resolvable:$true] %s16_s10  ;;  %s27_s12 = int_to_ptr.vmem [resolvable:$true] %s26_s12 }
   0x4   :  { %s86_s15 = scalar_lea.hbm %s212_s0, 128 }
   0x5   :  { %p87_p0 = scmp.ne.s32.totalorder %s212_s0, %s86_s15  ;;  %p90_p1 = scmp.lt.u32.totalorder %s86_s15, %s212_s0 }
   0x7   :  { %p92_p2 = pnand %p90_p1, %p87_p0 }
   0x9   :  { %95 = shalt.err (!%p92_p2)
}
   0xa   :  { %s96_s20 = scalar_lea.vmem %s17_s10, 128  ;;  %p101_p4 = scmp.lt.s32.totalorder %s17_s10, %s17_s10 }
   0xb   :  { %p97_p3 = scmp.ne.s32.totalorder %s17_s10, %s96_s20  ;;  %p102_p5 = scmp.lt.s32.totalorder %s96_s20, %s96_s20 }
   0xd   :  { %p103_p6 = por %p102_p5, %p101_p4 }
   0xf   :  { %p104_p7 = pnand %p103_p6, %p97_p3 }
  0x11   :  { %107 = shalt.err (!%p104_p7)
}
  0x12   :  { %19 = dma.hbm_to_vmem [thread:$0]  %s212_s0, 128, %s17_s10, [#allocation3]  }
  0x13   :  { %s108_s25 = scalar_lea.hbm %s213_s1, 128 }
  0x14   :  { %p109_p8 = scmp.ne.s32.totalorder %s213_s1, %s108_s25  ;;  %p112_p9 = scmp.lt.u32.totalorder %s108_s25, %s213_s1 }
  0x16   :  { %p114_p10 = pnand %p112_p9, %p109_p8 }
  0x18   :  { %117 = shalt.err (!%p114_p10)
}
  0x19   :  { %s118_s30 = scalar_lea.vmem %s27_s12, 128  ;;  %p123_p12 = scmp.lt.s32.totalorder %s27_s12, %s27_s12 }
  0x1a   :  { %p119_p11 = scmp.ne.s32.totalorder %s27_s12, %s118_s30  ;;  %p124_p13 = scmp.lt.s32.totalorder %s118_s30, %s118_s30 }
  0x1c   :  { %p125_p0 = por %p124_p13, %p123_p12 }
  0x1e   :  { %p126_p1 = pnand %p125_p0, %p119_p11 }
  0x20   :  { %129 = shalt.err (!%p126_p1)
}
  0x21   :  { %29 = dma.hbm_to_vmem [thread:$0]  %s213_s1, 128, %s27_s12, [#allocation6]  }
  0x22   :  { %152 = dma.done.wait [#allocation3], 128  }
  0x23   :  { %153 = vsyncadd [#allocation3], 4294967168 }
  0x24   :  { %154 = dma.done.wait [#allocation6], 128  }
  0x25   :  { %155 = vsyncadd [#allocation6], 4294967168  ;;  %v36_v0 = vld [vmem:[#allocation2] sm:$0xff]  ;;  %v37_v1 = vld [vmem:[#allocation5] sm:$0xff]  ;;  %s160_s1 = smov [#allocation7]  }
  0x26   :  { %vm38_vm0 = vcmp.gt.f32.partialorder %v37_v1, 0.0  ;;  %v40_v2 = vsub.f32 0.0, %v36_v0  ;;  %v39_v14 = vand.u32 2147483647, %v37_v1  ;;  %s67_s4 = sshll.u32 %s160_s1, 4  ;;  %s68_s4 = int_to_ptr.vmem [resolvable:$true] %s67_s4 }
  0x27   :  { %s130_s5 = scalar_lea.vmem %s68_s4, 128  ;;  %p135_p3 = scmp.lt.s32.totalorder %s68_s4, %s68_s4 }
  0x28   :  { %v41_v3 = vsel %vm38_vm0, %v40_v2, %v36_v0  ;;  %p131_p2 = scmp.ne.s32.totalorder %s68_s4, %s130_s5  ;;  %p136_p4 = scmp.lt.s32.totalorder %s130_s5, %s130_s5 }
  0x29   :  { %v42_v4 = vand.u32 2147483647, %v41_v3  ;;  %vm53_vm1 = vcmp.lt.f32.partialorder %v41_v3, 0.0  ;;  %v49_v11 = vmax.f32 %v41_v3, 0.0 }
  0x2a   :  { %p137_p5 = por %p136_p4, %p135_p3 }
  0x2b   :  { %v43_v5 = vsub.f32 0.0, %v42_v4 }
  0x2c   :  { %p138_p6 = pnand %p137_p5, %p131_p2 }
  0x2d   :  { %v44_v6 = vmul.f32 1.442695, %v43_v5 }
  0x2f   :  { %80 = vpow2.f32 %v44_v6 }
  0x39   :  { %v81_v7 = vpop.eup %80 }
  0x3a   :  { %v46_v8 = vadd.f32 1.0, %v81_v7  ;;  %v54_v9 = vsel %vm53_vm1, %v81_v7, 1.0 }
  0x3c   :  { %82 = vrcp.f32 %v46_v8 }
  0x3d   :  { %84 = vlog2.f32 %v46_v8 }
  0x46   :  { %v83_v10 = vpop.eup %82 }
  0x47   :  { %v85_v12 = vpop.eup %84  ;;  %v55_v13 = vmul.f32 %v83_v10, %v54_v9 }
  0x48   :  { %v51_v15 = vmul.f32 0.6931472, %v85_v12 }
  0x49   :  { %v56_v17 = vmul.f32 %v55_v13, %v55_v13 }
  0x4a   :  { %v52_v16 = vadd.f32 %v51_v15, %v49_v11 }
  0x4c   :  { %v57_v18 = vmul.f32 %v52_v16, %v39_v14 }
  0x4e   :  { %v58_v19 = vmul.f32 %v57_v18, %v56_v17 }
  0x50   :  { %60 = vst [vmem:[#allocation7] sm:$0xff] %v58_v19 }
  0x51   :  { %141 = shalt.err (!%p138_p6)
}
  0x52   :  { %s142_s8 = scalar_lea.hbm %s214_s2, 128 }
  0x53   :  { %p143_p7 = scmp.ne.s32.totalorder %s214_s2, %s142_s8  ;;  %p146_p8 = scmp.lt.u32.totalorder %s142_s8, %s214_s2 }
  0x55   :  { %p148_p9 = pnand %p146_p8, %p143_p7 }
  0x57   :  { %151 = shalt.err (!%p148_p9)
}
  0x58   :  { %70 = dma.vmem_to_hbm [thread:$0]  %s68_s4, 128, %s214_s2, [#allocation4]  }
  0x59   :  { %156 = dma.done.wait [#allocation4], 128  }
  0x5a   :  { %157 = vsyncadd [#allocation4], 4294967168 }
  0x5b   :  { %74 = vsyncpa [#allocation3], 1 }
  0x5c   :  { %75 = vsyncpa [#allocation6], 1 }
  0x5d   :  { %76 = vsyncpa [#allocation4], 1 }

</bundles_post_ra>
